<compile_context>
chip_gen: v7x
topology: tpu7x:2x2x1
jax: 0.10.0
libtpu: 0.0.40
codegen_flags: <defaults>
</compile_context>

<pallas_src>
import functools
import math

import jax
import jax.numpy as jnp
from jax.experimental import pallas as pl
from jax.experimental.pallas import tpu as pltpu

HIDDEN = 128
OUT_PAD_MULTIPLE = 8  # pad n_actions to a small, aligned output width


def _round_up(x, m):
    return (x + m - 1) // m * m


def _cdiv(a, b):
    return (a + b - 1) // b


def dqn_kernel(x_ref, w1_ref, b1_ref, w2_ref, b2_ref, w3_ref, b3_ref, o_ref):
    # fc1 + ReLU: K=1, so the "matmul" is an outer product -> pure VPU work.
    # (bb, 1) * (1, 128) broadcasts to (bb, 128); no MXU push/pop here.
    h1 = jnp.maximum(x_ref[...] * w1_ref[...] + b1_ref[...], 0.0)
    # fc2 + ReLU on the MXU, f32 accumulation.
    h2 = jnp.dot(h1, w2_ref[...], preferred_element_type=jnp.float32)
    h2 = jnp.maximum(h2 + b2_ref[...], 0.0)
    # fc3: narrow (n_actions padded to 8) output -> tiny HBM writeback.
    out = jnp.dot(h2, w3_ref[...], preferred_element_type=jnp.float32)
    o_ref[...] = (out + b3_ref[...]).astype(o_ref.dtype)


@functools.partial(jax.jit, static_argnames=("n_actions", "block_b"))
def dqn_forward(x, params, *, n_actions, block_b=2048):
    """x: (B, 1) float32 -> (B, n_actions) float32. `params` from init_params."""
    w1, b1, w2, b2, w3p, b3p = params
    B = x.shape[0]
    out_pad = w3p.shape[1]

    # Adaptive batch tiling: minimal padding, and (for large batches) at least
    # two parallel blocks so v7x's two TensorCores both get work.
    nb = _cdiv(B, block_b)
    if B >= 1024:
        nb = max(nb, 2)
    bb = _round_up(_cdiv(B, nb), 8)
    B_pad = nb * bb
    if B_pad != B:
        x = jnp.pad(x, ((0, B_pad - B), (0, 0)))

    act_spec = pl.BlockSpec((bb, 1), lambda i: (i, 0))
    out_spec = pl.BlockSpec((bb, out_pad), lambda i: (i, 0))
    # Weights/biases: same (full) block every grid step -> fetched once.
    const = lambda shape: pl.BlockSpec(shape, lambda i: (0,) * len(shape))
    # TODO(synk): pipeline_mode=pl.Buffered(1) on the const specs would save
    # ~130 KiB of duplicate weight buffers; VMEM headroom is ample so skipped.

    flops = 2 * B_pad * (HIDDEN + HIDDEN * HIDDEN + HIDDEN * out_pad)
    bytes_accessed = 4 * (
        B_pad * 1 + B_pad * out_pad            # activations in / out
        + HIDDEN + HIDDEN                      # w1, b1
        + HIDDEN * HIDDEN + HIDDEN             # w2, b2
        + HIDDEN * out_pad + out_pad           # w3, b3
    )

    out = pl.pallas_call(
        dqn_kernel,
        out_shape=jax.ShapeDtypeStruct((B_pad, out_pad), jnp.float32),
        grid=(nb,),
        in_specs=[
            act_spec,
            const(w1.shape), const(b1.shape),
            const(w2.shape), const(b2.shape),
            const(w3p.shape), const(b3p.shape),
        ],
        out_specs=out_spec,
        compiler_params=pltpu.CompilerParams(
            dimension_semantics=("parallel",)),
        cost_estimate=pl.CostEstimate(
            flops=flops, transcendentals=0, bytes_accessed=bytes_accessed),
    )(x, w1, b1, w2, b2, w3p, b3p)

    return out[:B, :n_actions]


def init_params(key, n_actions):
    """PyTorch-style uniform(+-1/sqrt(fan_in)) init.

    Weights stored transposed vs. PyTorch: (in_features, out_features);
    biases stored as (1, out_features).  The fc3 weight/bias are padded ONCE
    here to an 8-wide output (zeros in the extra columns) so the per-call
    forward does no padding work.
    """
    def linear(key, fan_in, fan_out):
        kw, kb = jax.random.split(key)
        bound = 1.0 / math.sqrt(fan_in)
        w = jax.random.uniform(kw, (fan_in, fan_out), jnp.float32, -bound, bound)
        b = jax.random.uniform(kb, (1, fan_out), jnp.float32, -bound, bound)
        return w, b

    k1, k2, k3 = jax.random.split(key, 3)
    w1, b1 = linear(k1, 1, HIDDEN)
    w2, b2 = linear(k2, HIDDEN, HIDDEN)
    w3, b3 = linear(k3, HIDDEN, n_actions)

    out_pad = max(_round_up(n_actions, OUT_PAD_MULTIPLE), OUT_PAD_MULTIPLE)
    w3p = jnp.zeros((HIDDEN, out_pad), jnp.float32).at[:, :n_actions].set(w3)
    b3p = jnp.zeros((1, out_pad), jnp.float32).at[:, :n_actions].set(b3)
    return w1, b1, w2, b2, w3p, b3p


def dqn_reference(x, params, n_actions):
    """Plain-JAX reference for correctness checking (uses padded fc3)."""
    w1, b1, w2, b2, w3p, b3p = params
    h1 = jax.nn.relu(x @ w1 + b1)
    h2 = jax.nn.relu(h1 @ w2 + b2)
    return (h2 @ w3p + b3p)[:, :n_actions]


if __name__ == "__main__":
    key = jax.random.PRNGKey(0)
    k_params, k_x1, k_x2, k_x3 = jax.random.split(key, 4)

    n_actions = 2   # Chain MDP: forward / backward
    params = init_params(k_params, n_actions)

    # Small batch (Chain-MDP step): (8, 1) scalar state feature per sample.
    x_small = jax.random.uniform(k_x1, (8, 1), jnp.float32)
    out_small = jax.block_until_ready(
        dqn_forward(x_small, params, n_actions=n_actions))
    ref_small = dqn_reference(x_small, params, n_actions)
    assert out_small.shape == (8, n_actions), out_small.shape
    assert jnp.allclose(out_small, ref_small, atol=1e-5, rtol=1e-5)

    # Non-multiple-of-8 batch: exercises row padding with adaptive tiling.
    x_mid = jax.random.uniform(k_x2, (601, 1), jnp.float32)
    out_mid = jax.block_until_ready(
        dqn_forward(x_mid, params, n_actions=n_actions))
    ref_mid = dqn_reference(x_mid, params, n_actions)
    assert out_mid.shape == (601, n_actions), out_mid.shape
    assert jnp.allclose(out_mid, ref_mid, atol=1e-5, rtol=1e-5)

    # Larger batch: exercises the >=2-block "parallel" grid path (v7x dual-TC).
    x_big = jax.random.uniform(k_x3, (1536, 1), jnp.float32)
    out_big = jax.block_until_ready(
        dqn_forward(x_big, params, n_actions=n_actions))
    ref_big = dqn_reference(x_big, params, n_actions)
    assert out_big.shape == (1536, n_actions), out_big.shape
    assert jnp.allclose(out_big, ref_big, atol=1e-5, rtol=1e-5)

    print("KERNEL_OK")
</pallas_src>

<mosaic_0001>
module attributes {stable_mosaic.version = 11 : i64} {
  func.func @dqn_kernel(%arg0: i32, %arg1: memref<8x1xf32, #tpu.memory_space<vmem>>, %arg2: memref<1x128xf32, #tpu.memory_space<vmem>>, %arg3: memref<1x128xf32, #tpu.memory_space<vmem>>, %arg4: memref<128x128xf32, #tpu.memory_space<vmem>>, %arg5: memref<1x128xf32, #tpu.memory_space<vmem>>, %arg6: memref<128x8xf32, #tpu.memory_space<vmem>>, %arg7: memref<1x8xf32, #tpu.memory_space<vmem>>, %arg8: memref<8x8xf32, #tpu.memory_space<vmem>>) attributes {dimension_semantics = [#tpu.dimension_semantics<parallel>], iteration_bounds = array<i64: 1>, scalar_prefetch = 0 : i64, scratch_operands = 0 : i64, tpu.core_type = #tpu.core_type<tc>, window_params = [{transform_indices = @transform_0, window_bounds = array<i64: 8, 1>}, {pipeline_mode = #tpu.pipeline_mode<synchronous>, transform_indices = @transform_1, window_bounds = array<i64: 1, 128>}, {pipeline_mode = #tpu.pipeline_mode<synchronous>, transform_indices = @transform_2, window_bounds = array<i64: 1, 128>}, {pipeline_mode = #tpu.pipeline_mode<synchronous>, transform_indices = @transform_3, window_bounds = array<i64: 128, 128>}, {pipeline_mode = #tpu.pipeline_mode<synchronous>, transform_indices = @transform_4, window_bounds = array<i64: 1, 128>}, {pipeline_mode = #tpu.pipeline_mode<synchronous>, transform_indices = @transform_5, window_bounds = array<i64: 128, 8>}, {pipeline_mode = #tpu.pipeline_mode<synchronous>, transform_indices = @transform_6, window_bounds = array<i64: 1, 8>}, {transform_indices = @transform_7, window_bounds = array<i64: 8, 8>}]} {
    %c0 = arith.constant 0 : index
    %c0_0 = arith.constant 0 : index
    %0 = vector.load %arg1[%c0, %c0_0] : memref<8x1xf32, #tpu.memory_space<vmem>>, vector<8x1xf32>
    %c0_1 = arith.constant 0 : index
    %c0_2 = arith.constant 0 : index
    %1 = vector.load %arg2[%c0_1, %c0_2] : memref<1x128xf32, #tpu.memory_space<vmem>>, vector<1x128xf32>
    %2 = vector.broadcast %0 : vector<8x1xf32> to vector<8x128xf32>
    %3 = vector.broadcast %1 : vector<1x128xf32> to vector<8x128xf32>
    %4 = arith.mulf %2, %3 : vector<8x128xf32>
    %c0_3 = arith.constant 0 : index
    %c0_4 = arith.constant 0 : index
    %5 = vector.load %arg3[%c0_3, %c0_4] : memref<1x128xf32, #tpu.memory_space<vmem>>, vector<1x128xf32>
    %6 = vector.broadcast %5 : vector<1x128xf32> to vector<8x128xf32>
    %7 = arith.addf %4, %6 : vector<8x128xf32>
    %cst = arith.constant 0.000000e+00 : f32
    %8 = vector.broadcast %cst : f32 to vector<8x128xf32>
    %9 = arith.maximumf %7, %8 : vector<8x128xf32>
    %c0_5 = arith.constant 0 : index
    %c0_6 = arith.constant 0 : index
    %10 = vector.load %arg4[%c0_5, %c0_6] : memref<128x128xf32, #tpu.memory_space<vmem>>, vector<128x128xf32>
    %cst_7 = arith.constant dense<0.000000e+00> : vector<8x128xf32>
    %11 = tpu.matmul %9, %10, %cst_7 {dimension_numbers = #tpu.dot_dimension_numbers<[1], [0], [0], [1], [0, 0, 1, 1], [], []>} : vector<8x128xf32>, vector<128x128xf32>, vector<8x128xf32> -> vector<8x128xf32>
    %c0_8 = arith.constant 0 : index
    %c0_9 = arith.constant 0 : index
    %12 = vector.load %arg5[%c0_8, %c0_9] : memref<1x128xf32, #tpu.memory_space<vmem>>, vector<1x128xf32>
    %13 = vector.broadcast %12 : vector<1x128xf32> to vector<8x128xf32>
    %14 = arith.addf %11, %13 : vector<8x128xf32>
    %cst_10 = arith.constant 0.000000e+00 : f32
    %15 = vector.broadcast %cst_10 : f32 to vector<8x128xf32>
    %16 = arith.maximumf %14, %15 : vector<8x128xf32>
    %c0_11 = arith.constant 0 : index
    %c0_12 = arith.constant 0 : index
    %17 = vector.load %arg6[%c0_11, %c0_12] : memref<128x8xf32, #tpu.memory_space<vmem>>, vector<128x8xf32>
    %cst_13 = arith.constant dense<0.000000e+00> : vector<8x8xf32>
    %18 = tpu.matmul %16, %17, %cst_13 {dimension_numbers = #tpu.dot_dimension_numbers<[1], [0], [0], [1], [0, 0, 1, 1], [], []>} : vector<8x128xf32>, vector<128x8xf32>, vector<8x8xf32> -> vector<8x8xf32>
    %c0_14 = arith.constant 0 : index
    %c0_15 = arith.constant 0 : index
    %19 = vector.load %arg7[%c0_14, %c0_15] : memref<1x8xf32, #tpu.memory_space<vmem>>, vector<1x8xf32>
    %20 = vector.broadcast %19 : vector<1x8xf32> to vector<8x8xf32>
    %21 = arith.addf %18, %20 : vector<8x8xf32>
    %c0_16 = arith.constant 0 : index
    %c0_17 = arith.constant 0 : index
    %22 = vector.load %arg8[%c0_16, %c0_17] : memref<8x8xf32, #tpu.memory_space<vmem>>, vector<8x8xf32>
    tpu.vector_store %arg8[%c0_16, %c0_17], %21 {strides = array<i32>} : memref<8x8xf32, #tpu.memory_space<vmem>>, vector<8x8xf32>,
    return
  }
  func.func @transform_0(%arg0: i32) -> (i32, i32) {
    %c0_i32 = arith.constant 0 : i32
    %c0_i32_0 = arith.constant 0 : i32
    return %arg0, %c0_i32 : i32, i32
  }
  func.func @transform_1(%arg0: i32) -> (i32, i32) {
    %c0_i32 = arith.constant 0 : i32
    %c0_i32_0 = arith.constant 0 : i32
    %c0_i32_1 = arith.constant 0 : i32
    return %c0_i32, %c0_i32_0 : i32, i32
  }
  func.func @transform_2(%arg0: i32) -> (i32, i32) {
    %c0_i32 = arith.constant 0 : i32
    %c0_i32_0 = arith.constant 0 : i32
    %c0_i32_1 = arith.constant 0 : i32
    return %c0_i32, %c0_i32_0 : i32, i32
  }
  func.func @transform_3(%arg0: i32) -> (i32, i32) {
    %c0_i32 = arith.constant 0 : i32
    %c0_i32_0 = arith.constant 0 : i32
    %c0_i32_1 = arith.constant 0 : i32
    return %c0_i32, %c0_i32_0 : i32, i32
  }
  func.func @transform_4(%arg0: i32) -> (i32, i32) {
    %c0_i32 = arith.constant 0 : i32
    %c0_i32_0 = arith.constant 0 : i32
    %c0_i32_1 = arith.constant 0 : i32
    return %c0_i32, %c0_i32_0 : i32, i32
  }
  func.func @transform_5(%arg0: i32) -> (i32, i32) {
    %c0_i32 = arith.constant 0 : i32
    %c0_i32_0 = arith.constant 0 : i32
    %c0_i32_1 = arith.constant 0 : i32
    return %c0_i32, %c0_i32_0 : i32, i32
  }
  func.func @transform_6(%arg0: i32) -> (i32, i32) {
    %c0_i32 = arith.constant 0 : i32
    %c0_i32_0 = arith.constant 0 : i32
    %c0_i32_1 = arith.constant 0 : i32
    return %c0_i32, %c0_i32_0 : i32, i32
  }
  func.func @transform_7(%arg0: i32) -> (i32, i32) {
    %c0_i32 = arith.constant 0 : i32
    %c0_i32_0 = arith.constant 0 : i32
    return %arg0, %c0_i32 : i32, i32
  }
}

</mosaic_0001>

<bundles_post_ra>
// kernel: dqn_forward.1
= control target key start
LH: loop header
LB: loop body
LE: loop exit
PB: predicated region body
PF: predicated region fallthrough
CT: control target
= control target key end

     0   :  { %v403_v0 = vmov 0   ;;  %v404_v2 = vmov 0.0|0.0   ;;  %vm405_vm0 = vmmov 0   ;;  %v406_v14 = vmov 0.0   ;;  %s577_s0 = inlined_call_operand.vmem [shape: f32[8,1], index: 0, kind: input, shape index: {}]   ;;  %s578_s3 = inlined_call_operand.vmem [shape: f32[128,128], index: 3, kind: input, shape index: {}]   ;;  %s579_s5 = inlined_call_operand.vmem [shape: f32[128,8], index: 5, kind: input, shape index: {}]   ;;  %s580_s1 = inlined_call_operand.vmem [shape: f32[1,128], index: 1, kind: input, shape index: {}]   ;;  %s581_s2 = inlined_call_operand.vmem [shape: f32[1,128], index: 2, kind: input, shape index: {}]   ;;  %s582_s4 = inlined_call_operand.vmem [shape: f32[1,128], index: 4, kind: input, shape index: {}]   ;;  %s583_s6 = inlined_call_operand.vmem [shape: f32[1,8], index: 6, kind: input, shape index: {}]   ;;  %s584_s7 = inlined_call_operand.vmem [shape: f32[8,8], index: 7, kind: output, shape index: {}]  }
   0x1   :  { %402 = vset.pattern.permute.xlu0 %v403_v0  ;;  %v26_v1 = vld [vmem:[%s577_s0] sm:$0xff]  ;;  %350 = vmatprep.subr.bf16.mxu0 %v404_v2  ;;  %v50_v4 = vld [vmem:[%s578_s3 + $0x8] sm:$0xff]  ;;  %v51_v6 = vld [vmem:[%s578_s3 + $0x10] sm:$0xff]  ;;  %vm236_vm1 = vcmask 64512  }
   0x2   :  { %v49_v3 = vld [vmem:[%s578_s3] sm:$0xff]  ;;  %30 = vperm.xlu0 %402, %v26_v1   ;;  %v52_v7 = vld [vmem:[%s578_s3 + $0x18] sm:$0xff]  ;;  %374 = vmatprep.subr.bf16.mxu1 %v404_v2  ;;  %v54_v10 = vld [vmem:[%s578_s3 + $0x28] sm:$0xff] }
   0x3   :  { %v351_v5 = vpack.c.bf16 %v50_v4, %v49_v3  ;;  %v354_v8 = vpack.c.bf16 %v52_v7, %v51_v6  ;;  %v53_v9 = vld [vmem:[%s578_s3 + $0x20] sm:$0xff]  ;;  %v55_v12 = vld [vmem:[%s578_s3 + $0x30] sm:$0xff]  ;;  %v56_v13 = vld [vmem:[%s578_s3 + $0x38] sm:$0xff]  ;;  %312 = vmatprep.mubr.msk.f32.mxu0 %vm405_vm0, %v406_v14  ;;  %347 = vmatprep.mubr.msk.f32.mxu1 %vm405_vm0, %v406_v14 }
   0x4   :  { %v357_v11 = vpack.c.bf16 %v54_v10, %v53_v9  ;;  %v143_v15 = vld [vmem:[%s579_s5] sm:$0xff]  ;;  %v144_v16 = vld [vmem:[%s579_s5 + $0x8] sm:$0xff]  ;;  %v145_v17 = vld [vmem:[%s579_s5 + $0x10] sm:$0xff]  ;;  %v360_v20 = vpack.c.bf16 %v56_v13, %v55_v12 }
   0x5   :  { %352 = vmatpush3.bf16.msra.mxu0 %v351_v5  ;;  %v375_v18 = vpack.c.bf16 %v144_v16, %v143_v15  ;;  %v146_v19 = vld [vmem:[%s579_s5 + $0x18] sm:$0xff]  ;;  %v57_v21 = vld [vmem:[%s578_s3 + $0x40] sm:$0xff]  ;;  %v58_v23 = vld [vmem:[%s578_s3 + $0x48] sm:$0xff] }
   0x6   :  { %353 = vmatprep.subr.bf16.mxu0 %v404_v2  ;;  %v378_v22 = vpack.c.bf16 %v146_v19, %v145_v17  ;;  %v147_v24 = vld [vmem:[%s579_s5 + $0x20] sm:$0xff]  ;;  %v148_v25 = vld [vmem:[%s579_s5 + $0x28] sm:$0xff]  ;;  %v363_v26 = vpack.c.bf16 %v58_v23, %v57_v21  ;;  %v59_v27 = vld [vmem:[%s578_s3 + $0x50] sm:$0xff] }
   0x7   :  { %376 = vmatpush3.bf16.msra.mxu1 %v375_v18  ;;  %v381_v28 = vpack.c.bf16 %v148_v25, %v147_v24  ;;  %v60_v29 = vld [vmem:[%s578_s3 + $0x58] sm:$0xff]  ;;  %v149_v30 = vld [vmem:[%s579_s5 + $0x30] sm:$0xff]  ;;  %v61_v33 = vld [vmem:[%s578_s3 + $0x60] sm:$0xff] }
   0x8   :  { %377 = vmatprep.subr.bf16.mxu1 %v404_v2  ;;  %v150_v31 = vld [vmem:[%s579_s5 + $0x38] sm:$0xff]  ;;  %v366_v32 = vpack.c.bf16 %v60_v29, %v59_v27  ;;  %v62_v35 = vld [vmem:[%s578_s3 + $0x68] sm:$0xff]  ;;  %v151_v36 = vld [vmem:[%s579_s5 + $0x40] sm:$0xff] }
   0x9   :  { %355 = vmatpush3.bf16.msra.mxu0 %v354_v8  ;;  %v384_v34 = vpack.c.bf16 %v150_v31, %v149_v30  ;;  %v152_v37 = vld [vmem:[%s579_s5 + $0x48] sm:$0xff]  ;;  %v369_v38 = vpack.c.bf16 %v62_v35, %v61_v33  ;;  %v63_v39 = vld [vmem:[%s578_s3 + $0x70] sm:$0xff]  ;;  %v64_v41 = vld [vmem:[%s578_s3 + $0x78] sm:$0xff] }
   0xa   :  { %356 = vmatprep.subr.bf16.mxu0 %v404_v2  ;;  %v387_v40 = vpack.c.bf16 %v152_v37, %v151_v36  ;;  %v153_v42 = vld [vmem:[%s579_s5 + $0x50] sm:$0xff]  ;;  %v154_v43 = vld [vmem:[%s579_s5 + $0x58] sm:$0xff]  ;;  %v372_v44 = vpack.c.bf16 %v64_v41, %v63_v39  ;;  %v155_v46 = vld [vmem:[%s579_s5 + $0x60] sm:$0xff] }
   0xb   :  { %379 = vmatpush3.bf16.msra.mxu1 %v378_v22  ;;  %v390_v45 = vpack.c.bf16 %v154_v43, %v153_v42  ;;  %v156_v47 = vld [vmem:[%s579_s5 + $0x68] sm:$0xff]  ;;  %v242_v49 = vld [vmem:[%s580_s1] ss:$0 sm:$0xff]  ;;  %v157_v55 = vld [vmem:[%s579_s5 + $0x70] sm:$0xff] }
   0xc   :  { %380 = vmatprep.subr.bf16.mxu1 %v404_v2  ;;  %v393_v48 = vpack.c.bf16 %v156_v47, %v155_v46  ;;  %v243_v50 = vld [vmem:[%s581_s2] ss:$0 sm:$0xff]  ;;  %v158_v56 = vld [vmem:[%s579_s5 + $0x78] sm:$0xff] }
   0xd   :  { %358 = vmatpush3.bf16.msra.mxu0 %v357_v11  ;;  %v396_v57 = vpack.c.bf16 %v158_v56, %v157_v55  ;;  %v244_v58 = vld [vmem:[%s582_s4] ss:$0 sm:$0xff] }
   0xe   :  { %359 = vmatprep.subr.bf16.mxu0 %v404_v2  ;;  %v245_v63 = vld [vmem:[%s583_s6] ss:$0 sm:$0xff] }
   0xf   :  { %382 = vmatpush3.bf16.msra.mxu1 %v381_v28 }
  0x10   :  { %383 = vmatprep.subr.bf16.mxu1 %v404_v2 }
  0x11   :  { %361 = vmatpush3.bf16.msra.mxu0 %v360_v20 }
  0x12   :  { %362 = vmatprep.subr.bf16.mxu0 %v404_v2 }
  0x13   :  { %385 = vmatpush3.bf16.msra.mxu1 %v384_v34 }
  0x14   :  { %386 = vmatprep.subr.bf16.mxu1 %v404_v2 }
  0x15   :  { %364 = vmatpush3.bf16.msra.mxu0 %v363_v26 }
  0x16   :  { %365 = vmatprep.subr.bf16.mxu0 %v404_v2 }
  0x17   :  { %388 = vmatpush3.bf16.msra.mxu1 %v387_v40 }
  0x18   :  { %389 = vmatprep.subr.bf16.mxu1 %v404_v2 }
  0x19   :  { %367 = vmatpush3.bf16.msra.mxu0 %v366_v32 }
  0x1a   :  { %368 = vmatprep.subr.bf16.mxu0 %v404_v2 }
  0x1b   :  { %391 = vmatpush3.bf16.msra.mxu1 %v390_v45 }
  0x1c   :  { %392 = vmatprep.subr.bf16.mxu1 %v404_v2 }
  0x1d   :  { %370 = vmatpush3.bf16.msra.mxu0 %v369_v38 }
  0x1e   :  { %371 = vmatprep.subr.bf16.mxu0 %v404_v2 }
  0x1f   :  { %394 = vmatpush3.bf16.msra.mxu1 %v393_v48 }
  0x20   :  { %395 = vmatprep.subr.bf16.mxu1 %v404_v2 }
  0x21   :  { %373 = vmatpush3.bf16.msra.mxu0 %v372_v44 }
  0x23   :  { %397 = vmatpush3.bf16.msra.mxu1 %v396_v57 }
  0x81   :  { %v31_v51 = vpop.permute.xlu0 %30 }
  0x82   :  { %v39_v52 = vmul.f32 %v242_v49, %v31_v51 }
  0x84   :  { %v47_v53 = vadd.f32 %v243_v50, %v39_v52 }
  0x86   :  { %v48_v54 = vmax.f32 %v47_v53, 0.0 }
  0x88   :  { %313 = vmatmul.mubr.f32.vlgmr.msra.gmra.mrb[0].mxu0 %v48_v54 }
 0x15b   :  { %v138_v59 = vpop.f32.mrb[0].mxu0 }
 0x15c   :  { %v139_v60 = vadd.f32 %v244_v58, %v138_v59  ;;  %v314_v61 = vpop.f32.mrb[1].mxu0 }
 0x15e   :  { %v142_v62 = vmax.f32 %v139_v60, 0.0 }
 0x160   :  { %348 = vmatmul.mubr.f32.vlgmr.msra.gmra.mrb[0].mxu1 %v142_v62 }
 0x233   :  { %v232_v0 = vpop.f32.mrb[0].mxu1 }
 0x234   :  { %v233_v1 = vadd.f32 %v245_v63, %v232_v0  ;;  %v349_v2 = vpop.f32.mrb[1].mxu1 }
 0x236   :  { %237 = vst.msk [vmem:[%s584_s7] sm:$0xff] %vm236_vm1, %v233_v1 }

</bundles_post_ra>
